<compile_context>
chip_gen: v7x
topology: tpu7x:2x2x1
jax: 0.10.0
libtpu: 0.0.40
codegen_flags: <defaults>
</compile_context>

<pallas_src>
import jax
import jax.numpy as jnp
import numpy as np
from jax import lax
from jax.experimental import pallas as pl
from jax.experimental.pallas import tpu as pltpu


_LANE = 128
_MAX_TILE = 2048       # lanes per grid step; keeps vreg pressure sane for small B
_PAD_ERR = -1e30       # relu() zeroes padded positions' contribution


def _round_up(x, m):
    return (x + m - 1) // m * m


def _lovasz_kernel(err_ref, gt_ref, gts_ref, out_ref,
                   cum_carry_ref, jac_carry_ref, loss_ref):
    j = pl.program_id(0)
    n_j = pl.num_programs(0)

    @pl.when(j == 0)
    def _init():
        cum_carry_ref[...] = jnp.zeros_like(cum_carry_ref)
        jac_carry_ref[...] = jnp.zeros_like(jac_carry_ref)
        loss_ref[...] = jnp.zeros_like(loss_ref)

    gt = gt_ref[...].astype(jnp.float32)          # (B, T) labels in {0, 1}
    B, T = gt.shape
    lane = lax.broadcasted_iota(jnp.int32, (B, T), 1)

    carry_in = cum_carry_ref[...]                 # (B, 1) cumsum(gt) before tile
    gts = gts_ref[...]                            # (B, 1) total positives

    # Inclusive prefix sum of gt along the lane axis: Hillis-Steele scan,
    # log2(T) steps of XLU roll + VPU masked add.  No N x N matrices.
    cum = gt
    d = 1
    while d < T:
        rolled = pltpu.roll(cum, shift=d, axis=1)
        cum = cum + jnp.where(lane >= d, rolled, 0.0)
        d *= 2

    cum_gt = cum + carry_in                       # global inclusive cumsum(gt)
    # Global 1-based position = j*T + lane + 1, so cumsum(1 - gt) = pos - cum_gt.
    pos = (lane + 1 + j * T).astype(jnp.float32)

    intersection = gts - cum_gt
    union = gts + pos - cum_gt                    # = gts + cumsum(1 - gt)
    jaccard = 1.0 - intersection * pl.reciprocal(union, approx=False)

    # lovasz grad = first difference of jaccard; carry last value across tiles.
    jac_shift = pltpu.roll(jaccard, shift=1, axis=1)
    jac_prev = jnp.where(lane == 0, jac_carry_ref[...], jac_shift)
    grad = jaccard - jac_prev

    err = err_ref[...]                            # (B, T) sorted hinge errors
    loss_ref[...] += jnp.sum(jnp.maximum(err, 0.0) * grad,
                             axis=-1, keepdims=True)

    # Carries for the next tile: pure (B, 1) math, no lane extraction needed.
    cum_out = carry_in + jnp.sum(gt, axis=-1, keepdims=True)
    pos_last = ((j + 1) * T).astype(jnp.float32)
    union_last = gts + pos_last - cum_out
    jac_carry_ref[...] = 1.0 - (gts - cum_out) * pl.reciprocal(union_last,
                                                               approx=False)
    cum_carry_ref[...] = cum_out

    @pl.when(j == n_j - 1)
    def _finish():
        out_ref[...] = jnp.mean(loss_ref[...], axis=0, keepdims=True)


def _lovasz_pallas(errors_sorted, gt_sorted, gts, tile):
    B, n_pad = errors_sorted.shape
    n_tiles = n_pad // tile
    out = pl.pallas_call(
        _lovasz_kernel,
        out_shape=jax.ShapeDtypeStruct((1, 1), jnp.float32),
        grid=(n_tiles,),
        in_specs=[
            pl.BlockSpec((B, tile), lambda j: (0, j)),   # errors (f32)
            pl.BlockSpec((B, tile), lambda j: (0, j)),   # labels (bf16)
            pl.BlockSpec((B, 1), lambda j: (0, 0)),      # total positives (resident)
        ],
        out_specs=pl.BlockSpec((1, 1), lambda j: (0, 0)),
        scratch_shapes=[
            pltpu.VMEM((B, 1), jnp.float32),   # running cumsum(gt)
            pltpu.VMEM((B, 1), jnp.float32),   # jaccard at previous lane
            pltpu.VMEM((B, 1), jnp.float32),   # per-image loss accumulator
        ],
        # TODO(synk): the N axis is a carried reduction ("arbitrary"); a batch
        # grid axis marked "parallel" (v7x 2-TC sharding) would require padding
        # B to a multiple of 8, a net loss for the small batches used here.
        compiler_params=pltpu.CompilerParams(
            dimension_semantics=("arbitrary",)),
    )(errors_sorted, gt_sorted, gts)
    return out[0, 0]


@jax.jit
def lovasz_hinge_loss(logits, targets):
    """Equivalent of LovaszHingeLoss.forward: lovasz_hinge(..., per_image=True)."""
    # squeeze(1): (B, 1, H, W) -> (B, H, W)
    logits = jnp.squeeze(logits, axis=1).astype(jnp.float32)
    targets = jnp.squeeze(targets, axis=1).astype(jnp.float32)
    B = logits.shape[0]
    N = logits.shape[1] * logits.shape[2]
    logits = logits.reshape(B, N)
    labels = targets.reshape(B, N)

    # Hinge errors and per-image descending sort — JAX glue.
    # TODO(synk): descending argsort + gather kept in plain JAX; no clean
    # Pallas-TPU sort primitive.
    signs = 2.0 * labels - 1.0
    errors = 1.0 - logits * signs
    order = jnp.argsort(-errors, axis=-1)
    errors_sorted = jnp.take_along_axis(errors, order, axis=-1)
    gt_sorted = jnp.take_along_axis(labels, order, axis=-1)

    gts = jnp.sum(labels, axis=-1, keepdims=True)        # (B, 1) total positives

    # Pad N to a multiple of the lane tile.  Padded errors are very negative
    # (relu -> 0) and padded labels are 0, so they contribute nothing.
    tile = min(_MAX_TILE, _round_up(N, _LANE))
    n_pad = _round_up(N, tile)
    if n_pad != N:
        errors_sorted = jnp.pad(errors_sorted, ((0, 0), (0, n_pad - N)),
                                constant_values=_PAD_ERR)
        gt_sorted = jnp.pad(gt_sorted, ((0, 0), (0, n_pad - N)),
                            constant_values=0.0)

    # Labels are exactly {0, 1}: ship as bf16 to halve that input's DMA bytes.
    return _lovasz_pallas(errors_sorted, gt_sorted.astype(jnp.bfloat16),
                          gts, tile)


def _lovasz_hinge_ref(logits, targets):
    """Pure-JAX reference (mirrors the PyTorch lovasz_hinge, per_image=True)."""
    logits = jnp.squeeze(logits, axis=1).astype(jnp.float32)
    targets = jnp.squeeze(targets, axis=1).astype(jnp.float32)
    B = logits.shape[0]
    N = logits.shape[1] * logits.shape[2]
    logits = logits.reshape(B, N)
    labels = targets.reshape(B, N)

    def per_image(log, lab):
        signs = 2.0 * lab - 1.0
        errors = 1.0 - log * signs
        order = jnp.argsort(-errors)
        errors_sorted = errors[order]
        gt_sorted = lab[order]
        gts = jnp.sum(gt_sorted)
        intersection = gts - jnp.cumsum(gt_sorted)
        union = gts + jnp.cumsum(1.0 - gt_sorted)
        jaccard = 1.0 - intersection / union
        grad = jnp.concatenate([jaccard[:1], jaccard[1:] - jaccard[:-1]])
        return jnp.dot(jax.nn.relu(errors_sorted), grad)

    return jnp.mean(jax.vmap(per_image)(logits, labels))


if __name__ == "__main__":
    key = jax.random.PRNGKey(0)
    B, C = 2, 1  # binary-segmentation logits/targets, NCHW

    # (16, 16): exact single-tile path.  (48, 48): multi-tile + padding path
    # (N=2304 -> tile 2048, padded to 4096, 2 grid steps with carried state).
    for (H, W) in [(16, 16), (48, 48)]:
        k1, k2 = jax.random.split(jax.random.fold_in(key, H))
        logits = jax.random.normal(k1, (B, C, H, W), dtype=jnp.float32)
        targets = (jax.random.uniform(k2, (B, C, H, W)) > 0.5).astype(jnp.float32)

        loss = lovasz_hinge_loss(logits, targets)
        jax.block_until_ready(loss)

        ref = _lovasz_hinge_ref(logits, targets)
        jax.block_until_ready(ref)
        np.testing.assert_allclose(np.asarray(loss), np.asarray(ref),
                                   atol=1e-4, rtol=1e-4)

    print("KERNEL_OK")
</pallas_src>

<mosaic_0001>
module attributes {stable_mosaic.version = 11 : i64} {
  func.func @_lovasz_kernel(%arg0: i32, %arg1: memref<2x256xf32, #tpu.memory_space<vmem>>, %arg2: memref<2x256xbf16, #tpu.memory_space<vmem>>, %arg3: memref<2x1xf32, #tpu.memory_space<vmem>>, %arg4: memref<1x1xf32, #tpu.memory_space<vmem>>, %arg5: memref<2x1xf32, #tpu.memory_space<vmem>>, %arg6: memref<2x1xf32, #tpu.memory_space<vmem>>, %arg7: memref<2x1xf32, #tpu.memory_space<vmem>>) attributes {dimension_semantics = [#tpu.dimension_semantics<arbitrary>], iteration_bounds = array<i64: 1>, scalar_prefetch = 0 : i64, scratch_operands = 3 : i64, tpu.core_type = #tpu.core_type<tc>, window_params = [{transform_indices = @transform_0, window_bounds = array<i64: 2, 256>}, {transform_indices = @transform_1, window_bounds = array<i64: 2, 256>}, {pipeline_mode = #tpu.pipeline_mode<synchronous>, transform_indices = @transform_2, window_bounds = array<i64: 2, 1>}, {pipeline_mode = #tpu.pipeline_mode<synchronous>, transform_indices = @transform_3, window_bounds = array<i64: 1, 1>}]} {
    %c0_i32 = arith.constant 0 : i32
    %0 = arith.cmpi eq, %arg0, %c0_i32 : i32
    %1 = arith.extui %0 : i1 to i32
    %c0_i32_0 = arith.constant 0 : i32
    %2 = arith.cmpi ne, %1, %c0_i32_0 : i32
    scf.if %2 {
      %cst_45 = arith.constant 0.000000e+00 : f32
      %109 = vector.broadcast %cst_45 : f32 to vector<2x1xf32>
      %c0_46 = arith.constant 0 : index
      %c0_47 = arith.constant 0 : index
      %110 = vector.load %arg5[%c0_46, %c0_47] : memref<2x1xf32, #tpu.memory_space<vmem>>, vector<2x1xf32>
      tpu.vector_store %arg5[%c0_46, %c0_47], %109 {strides = array<i32>} : memref<2x1xf32, #tpu.memory_space<vmem>>, vector<2x1xf32>,
      %cst_48 = arith.constant 0.000000e+00 : f32
      %111 = vector.broadcast %cst_48 : f32 to vector<2x1xf32>
      %c0_49 = arith.constant 0 : index
      %c0_50 = arith.constant 0 : index
      %112 = vector.load %arg6[%c0_49, %c0_50] : memref<2x1xf32, #tpu.memory_space<vmem>>, vector<2x1xf32>
      tpu.vector_store %arg6[%c0_49, %c0_50], %111 {strides = array<i32>} : memref<2x1xf32, #tpu.memory_space<vmem>>, vector<2x1xf32>,
      %cst_51 = arith.constant 0.000000e+00 : f32
      %113 = vector.broadcast %cst_51 : f32 to vector<2x1xf32>
      %c0_52 = arith.constant 0 : index
      %c0_53 = arith.constant 0 : index
      %114 = vector.load %arg7[%c0_52, %c0_53] : memref<2x1xf32, #tpu.memory_space<vmem>>, vector<2x1xf32>
      tpu.vector_store %arg7[%c0_52, %c0_53], %113 {strides = array<i32>} : memref<2x1xf32, #tpu.memory_space<vmem>>, vector<2x1xf32>,
    } else {
    }
    %c0 = arith.constant 0 : index
    %c0_1 = arith.constant 0 : index
    %3 = vector.load %arg2[%c0, %c0_1] : memref<2x256xbf16, #tpu.memory_space<vmem>>, vector<2x256xbf16>
    %4 = arith.extf %3 : vector<2x256xbf16> to vector<2x256xf32>
    %5 = tpu.iota {dimensions = array<i32: 1>} : vector<2x256xi32>
    %c0_2 = arith.constant 0 : index
    %c0_3 = arith.constant 0 : index
    %6 = vector.load %arg5[%c0_2, %c0_3] : memref<2x1xf32, #tpu.memory_space<vmem>>, vector<2x1xf32>
    %c0_4 = arith.constant 0 : index
    %c0_5 = arith.constant 0 : index
    %7 = vector.load %arg3[%c0_4, %c0_5] : memref<2x1xf32, #tpu.memory_space<vmem>>, vector<2x1xf32>
    %c1_i32 = arith.constant 1 : i32
    %8 = tpu.dynamic_rotate %4 by %c1_i32 dim 1 : vector<2x256xf32>, i32 -> vector<2x256xf32>
    %c1_i32_6 = arith.constant 1 : i32
    %9 = vector.broadcast %c1_i32_6 : i32 to vector<2x256xi32>
    %10 = arith.cmpi sge, %5, %9 : vector<2x256xi32>
    %cst = arith.constant 0.000000e+00 : f32
    %11 = vector.broadcast %cst : f32 to vector<2x256xf32>
    %12 = arith.select %10, %8, %11 : vector<2x256xi1>, vector<2x256xf32>
    %13 = arith.addf %4, %12 : vector<2x256xf32>
    %c2_i32 = arith.constant 2 : i32
    %14 = tpu.dynamic_rotate %13 by %c2_i32 dim 1 : vector<2x256xf32>, i32 -> vector<2x256xf32>
    %c2_i32_7 = arith.constant 2 : i32
    %15 = vector.broadcast %c2_i32_7 : i32 to vector<2x256xi32>
    %16 = arith.cmpi sge, %5, %15 : vector<2x256xi32>
    %cst_8 = arith.constant 0.000000e+00 : f32
    %17 = vector.broadcast %cst_8 : f32 to vector<2x256xf32>
    %18 = arith.select %16, %14, %17 : vector<2x256xi1>, vector<2x256xf32>
    %19 = arith.addf %13, %18 : vector<2x256xf32>
    %c4_i32 = arith.constant 4 : i32
    %20 = tpu.dynamic_rotate %19 by %c4_i32 dim 1 : vector<2x256xf32>, i32 -> vector<2x256xf32>
    %c4_i32_9 = arith.constant 4 : i32
    %21 = vector.broadcast %c4_i32_9 : i32 to vector<2x256xi32>
    %22 = arith.cmpi sge, %5, %21 : vector<2x256xi32>
    %cst_10 = arith.constant 0.000000e+00 : f32
    %23 = vector.broadcast %cst_10 : f32 to vector<2x256xf32>
    %24 = arith.select %22, %20, %23 : vector<2x256xi1>, vector<2x256xf32>
    %25 = arith.addf %19, %24 : vector<2x256xf32>
    %c8_i32 = arith.constant 8 : i32
    %26 = tpu.dynamic_rotate %25 by %c8_i32 dim 1 : vector<2x256xf32>, i32 -> vector<2x256xf32>
    %c8_i32_11 = arith.constant 8 : i32
    %27 = vector.broadcast %c8_i32_11 : i32 to vector<2x256xi32>
    %28 = arith.cmpi sge, %5, %27 : vector<2x256xi32>
    %cst_12 = arith.constant 0.000000e+00 : f32
    %29 = vector.broadcast %cst_12 : f32 to vector<2x256xf32>
    %30 = arith.select %28, %26, %29 : vector<2x256xi1>, vector<2x256xf32>
    %31 = arith.addf %25, %30 : vector<2x256xf32>
    %c16_i32 = arith.constant 16 : i32
    %32 = tpu.dynamic_rotate %31 by %c16_i32 dim 1 : vector<2x256xf32>, i32 -> vector<2x256xf32>
    %c16_i32_13 = arith.constant 16 : i32
    %33 = vector.broadcast %c16_i32_13 : i32 to vector<2x256xi32>
    %34 = arith.cmpi sge, %5, %33 : vector<2x256xi32>
    %cst_14 = arith.constant 0.000000e+00 : f32
    %35 = vector.broadcast %cst_14 : f32 to vector<2x256xf32>
    %36 = arith.select %34, %32, %35 : vector<2x256xi1>, vector<2x256xf32>
    %37 = arith.addf %31, %36 : vector<2x256xf32>
    %c32_i32 = arith.constant 32 : i32
    %38 = tpu.dynamic_rotate %37 by %c32_i32 dim 1 : vector<2x256xf32>, i32 -> vector<2x256xf32>
    %c32_i32_15 = arith.constant 32 : i32
    %39 = vector.broadcast %c32_i32_15 : i32 to vector<2x256xi32>
    %40 = arith.cmpi sge, %5, %39 : vector<2x256xi32>
    %cst_16 = arith.constant 0.000000e+00 : f32
    %41 = vector.broadcast %cst_16 : f32 to vector<2x256xf32>
    %42 = arith.select %40, %38, %41 : vector<2x256xi1>, vector<2x256xf32>
    %43 = arith.addf %37, %42 : vector<2x256xf32>
    %c64_i32 = arith.constant 64 : i32
    %44 = tpu.dynamic_rotate %43 by %c64_i32 dim 1 : vector<2x256xf32>, i32 -> vector<2x256xf32>
    %c64_i32_17 = arith.constant 64 : i32
    %45 = vector.broadcast %c64_i32_17 : i32 to vector<2x256xi32>
    %46 = arith.cmpi sge, %5, %45 : vector<2x256xi32>
    %cst_18 = arith.constant 0.000000e+00 : f32
    %47 = vector.broadcast %cst_18 : f32 to vector<2x256xf32>
    %48 = arith.select %46, %44, %47 : vector<2x256xi1>, vector<2x256xf32>
    %49 = arith.addf %43, %48 : vector<2x256xf32>
    %c128_i32 = arith.constant 128 : i32
    %50 = tpu.dynamic_rotate %49 by %c128_i32 dim 1 : vector<2x256xf32>, i32 -> vector<2x256xf32>
    %c128_i32_19 = arith.constant 128 : i32
    %51 = vector.broadcast %c128_i32_19 : i32 to vector<2x256xi32>
    %52 = arith.cmpi sge, %5, %51 : vector<2x256xi32>
    %cst_20 = arith.constant 0.000000e+00 : f32
    %53 = vector.broadcast %cst_20 : f32 to vector<2x256xf32>
    %54 = arith.select %52, %50, %53 : vector<2x256xi1>, vector<2x256xf32>
    %55 = arith.addf %49, %54 : vector<2x256xf32>
    %56 = vector.broadcast %6 : vector<2x1xf32> to vector<2x256xf32>
    %57 = arith.addf %55, %56 : vector<2x256xf32>
    %c1_i32_21 = arith.constant 1 : i32
    %58 = vector.broadcast %c1_i32_21 : i32 to vector<2x256xi32>
    %59 = arith.addi %5, %58 : vector<2x256xi32>
    %c256_i32 = arith.constant 256 : i32
    %60 = arith.muli %arg0, %c256_i32 : i32
    %61 = vector.broadcast %60 : i32 to vector<2x256xi32>
    %62 = arith.addi %59, %61 : vector<2x256xi32>
    %63 = arith.sitofp %62 : vector<2x256xi32> to vector<2x256xf32>
    %64 = vector.broadcast %7 : vector<2x1xf32> to vector<2x256xf32>
    %65 = arith.subf %64, %57 : vector<2x256xf32>
    %66 = vector.broadcast %7 : vector<2x1xf32> to vector<2x256xf32>
    %67 = arith.addf %66, %63 : vector<2x256xf32>
    %68 = arith.subf %67, %57 : vector<2x256xf32>
    %69 = tpu.reciprocal %68 : vector<2x256xf32> -> vector<2x256xf32>
    %70 = arith.mulf %65, %69 : vector<2x256xf32>
    %cst_22 = arith.constant 1.000000e+00 : f32
    %71 = vector.broadcast %cst_22 : f32 to vector<2x256xf32>
    %72 = arith.subf %71, %70 : vector<2x256xf32>
    %c1_i32_23 = arith.constant 1 : i32
    %73 = tpu.dynamic_rotate %72 by %c1_i32_23 dim 1 : vector<2x256xf32>, i32 -> vector<2x256xf32>
    %c0_i32_24 = arith.constant 0 : i32
    %74 = vector.broadcast %c0_i32_24 : i32 to vector<2x256xi32>
    %75 = arith.cmpi eq, %5, %74 : vector<2x256xi32>
    %c0_25 = arith.constant 0 : index
    %c0_26 = arith.constant 0 : index
    %76 = vector.load %arg6[%c0_25, %c0_26] : memref<2x1xf32, #tpu.memory_space<vmem>>, vector<2x1xf32>
    %77 = vector.shape_cast %76 : vector<2x1xf32> to vector<2x1xf32>
    %78 = vector.broadcast %77 : vector<2x1xf32> to vector<2x256xf32>
    %79 = arith.select %75, %78, %73 : vector<2x256xi1>, vector<2x256xf32>
    %80 = arith.subf %72, %79 : vector<2x256xf32>
    %c0_27 = arith.constant 0 : index
    %c0_28 = arith.constant 0 : index
    %81 = vector.load %arg1[%c0_27, %c0_28] : memref<2x256xf32, #tpu.memory_space<vmem>>, vector<2x256xf32>
    %c0_29 = arith.constant 0 : index
    %c0_30 = arith.constant 0 : index
    %82 = vector.load %arg7[%c0_29, %c0_30] : memref<2x1xf32, #tpu.memory_space<vmem>>, vector<2x1xf32>
    %cst_31 = arith.constant 0.000000e+00 : f32
    %83 = vector.broadcast %cst_31 : f32 to vector<2x256xf32>
    %84 = arith.maximumf %81, %83 : vector<2x256xf32>
    %85 = arith.mulf %84, %80 : vector<2x256xf32>
    %cst_32 = arith.constant dense<0.000000e+00> : vector<2xf32>
    %86 = vector.multi_reduction <add>, %85, %cst_32 [1] : vector<2x256xf32> to vector<2xf32>
    %87 = vector.shape_cast %86 : vector<2xf32> to vector<2x1xf32>
    %88 = arith.addf %82, %87 : vector<2x1xf32>
    %c0_33 = arith.constant 0 : index
    %c0_34 = arith.constant 0 : index
    %89 = vector.load %arg7[%c0_33, %c0_34] : memref<2x1xf32, #tpu.memory_space<vmem>>, vector<2x1xf32>
    tpu.vector_store %arg7[%c0_33, %c0_34], %88 {strides = array<i32>} : memref<2x1xf32, #tpu.memory_space<vmem>>, vector<2x1xf32>,
    %cst_35 = arith.constant dense<0.000000e+00> : vector<2xf32>
    %90 = vector.multi_reduction <add>, %4, %cst_35 [1] : vector<2x256xf32> to vector<2xf32>
    %91 = vector.shape_cast %90 : vector<2xf32> to vector<2x1xf32>
    %92 = arith.addf %6, %91 : vector<2x1xf32>
    %c1_i32_36 = arith.constant 1 : i32
    %93 = arith.addi %arg0, %c1_i32_36 : i32
    %c256_i32_37 = arith.constant 256 : i32
    %94 = arith.muli %93, %c256_i32_37 : i32
    %95 = arith.sitofp %94 : i32 to f32
    %96 = vector.broadcast %95 : f32 to vector<2x1xf32>
    %97 = arith.addf %7, %96 : vector<2x1xf32>
    %98 = arith.subf %97, %92 : vector<2x1xf32>
    %99 = arith.subf %7, %92 : vector<2x1xf32>
    %100 = tpu.reciprocal %98 : vector<2x1xf32> -> vector<2x1xf32>
    %101 = arith.mulf %99, %100 : vector<2x1xf32>
    %cst_38 = arith.constant 1.000000e+00 : f32
    %102 = vector.broadcast %cst_38 : f32 to vector<2x1xf32>
    %103 = arith.subf %102, %101 : vector<2x1xf32>
    %c0_39 = arith.constant 0 : index
    %c0_40 = arith.constant 0 : index
    %104 = vector.load %arg6[%c0_39, %c0_40] : memref<2x1xf32, #tpu.memory_space<vmem>>, vector<2x1xf32>
    tpu.vector_store %arg6[%c0_39, %c0_40], %103 {strides = array<i32>} : memref<2x1xf32, #tpu.memory_space<vmem>>, vector<2x1xf32>,
    %c0_41 = arith.constant 0 : index
    %c0_42 = arith.constant 0 : index
    %105 = vector.load %arg5[%c0_41, %c0_42] : memref<2x1xf32, #tpu.memory_space<vmem>>, vector<2x1xf32>
    tpu.vector_store %arg5[%c0_41, %c0_42], %92 {strides = array<i32>} : memref<2x1xf32, #tpu.memory_space<vmem>>, vector<2x1xf32>,
    %c0_i32_43 = arith.constant 0 : i32
    %106 = arith.cmpi eq, %arg0, %c0_i32_43 : i32
    %107 = arith.extui %106 : i1 to i32
    %c0_i32_44 = arith.constant 0 : i32
    %108 = arith.cmpi ne, %107, %c0_i32_44 : i32
    scf.if %108 {
      %c0_45 = arith.constant 0 : index
      %c0_46 = arith.constant 0 : index
      %109 = vector.load %arg7[%c0_45, %c0_46] : memref<2x1xf32, #tpu.memory_space<vmem>>, vector<2x1xf32>
      %cst_47 = arith.constant dense<0.000000e+00> : vector<1xf32>
      %110 = vector.multi_reduction <add>, %109, %cst_47 [0] : vector<2x1xf32> to vector<1xf32>
      %111 = vector.shape_cast %110 : vector<1xf32> to vector<1x1xf32>
      %cst_48 = arith.constant 2.000000e+00 : f32
      %112 = vector.broadcast %cst_48 : f32 to vector<1x1xf32>
      %113 = arith.divf %111, %112 : vector<1x1xf32>
      %c0_49 = arith.constant 0 : index
      %c0_50 = arith.constant 0 : index
      %114 = vector.load %arg4[%c0_49, %c0_50] : memref<1x1xf32, #tpu.memory_space<vmem>>, vector<1x1xf32>
      tpu.vector_store %arg4[%c0_49, %c0_50], %113 {strides = array<i32>} : memref<1x1xf32, #tpu.memory_space<vmem>>, vector<1x1xf32>,
    } else {
    }
    return
  }
  func.func @transform_0(%arg0: i32) -> (i32, i32) {
    %c0_i32 = arith.constant 0 : i32
    %c0_i32_0 = arith.constant 0 : i32
    return %c0_i32, %arg0 : i32, i32
  }
  func.func @transform_1(%arg0: i32) -> (i32, i32) {
    %c0_i32 = arith.constant 0 : i32
    %c0_i32_0 = arith.constant 0 : i32
    return %c0_i32, %arg0 : i32, i32
  }
  func.func @transform_2(%arg0: i32) -> (i32, i32) {
    %c0_i32 = arith.constant 0 : i32
    %c0_i32_0 = arith.constant 0 : i32
    %c0_i32_1 = arith.constant 0 : i32
    return %c0_i32, %c0_i32_0 : i32, i32
  }
  func.func @transform_3(%arg0: i32) -> (i32, i32) {
    %c0_i32 = arith.constant 0 : i32
    %c0_i32_0 = arith.constant 0 : i32
    %c0_i32_1 = arith.constant 0 : i32
    return %c0_i32, %c0_i32_0 : i32, i32
  }
}

</mosaic_0001>

<bundles_post_ra>
// kernel: squeeze.4
= control target key start
LH: loop header
LB: loop body
LE: loop exit
PB: predicated region body
PF: predicated region fallthrough
CT: control target
= control target key end

     0   :  { %s8_s6 = smov 3  ;;  %s11_s7 = smov 12  ;;  %vm13_vm0 = vcmask 1043458   ;;  %vm3_vm1 = vcmask 130048   ;;  %vm17_vm2 = vcmask 1048448   ;;  %vm31_vm3 = vcmask 917248   ;;  %s213_s0 = inlined_call_operand.vmem [shape: f32[2,1,16,16], index: 0, kind: input, shape index: {}]   ;;  %s214_s1 = inlined_call_operand.vmem [shape: f32[2,256], index: 1, kind: output, shape index: {}]  }
   0x1   :  { %v116_v0 = vld [vmem:[%s213_s0 + $0x7] ss:$16 sm:%s8_s6]   ;;  %v117_v1 = vld [vmem:[%s213_s0 - $0x11] ss:$16 sm:%s11_s7]   ;;  %s36_s12 = smov 3  ;;  %s39_s15 = smov 12 }
   0x2   :  { %v14_v2 = vsel %vm13_vm0, %v117_v1, %v116_v0  ;;  %v120_v3 = vld [vmem:[%s213_s0 + $0x5] ss:$16 sm:%s36_s12]   ;;  %s138_s16 = smov 112   ;;  %v121_v4 = vld [vmem:[%s213_s0 - $0x13] ss:$16 sm:%s39_s15]   ;;  %s22_s19 = smov 3 }
   0x3   :  { %15 = vrot.lane.b32.xlu0 %v14_v2, %s138_s16  ;;  %s25_s20 = smov 12  ;;  %v42_v5 = vsel %vm13_vm0, %v121_v4, %v120_v3  ;;  %v118_v6 = vld [vmem:[%s213_s0 + $0x6] ss:$16 sm:%s22_s19]   ;;  %s50_s25 = smov 3  ;;  %vm45_vm4 = vcmask 786048   ;;  %vm59_vm5 = vcmask 654848  }
   0x4   :  { %v119_v7 = vld [vmem:[%s213_s0 - $0x12] ss:$16 sm:%s25_s20]   ;;  %s139_s26 = smov 80   ;;  %v122_v9 = vld [vmem:[%s213_s0 + $0x4] ss:$16 sm:%s50_s25]   ;;  %s53_s29 = smov 12 }
   0x5   :  { %43 = vrot.lane.b32.xlu1 %v42_v5, %s139_s26  ;;  %v28_v8 = vsel %vm13_vm0, %v119_v7, %v118_v6  ;;  %v123_v10 = vld [vmem:[%s213_s0 - $0x14] ss:$16 sm:%s53_s29]   ;;  %s64_s3 = smov 3  ;;  %s67_s4 = smov 12  ;;  %vm73_vm6 = vcmask 523648   ;;  %vm87_vm7 = vcmask 392448  }
   0x6   :  { %s140_s5 = smov 96   ;;  %v56_v11 = vsel %vm13_vm0, %v123_v10, %v122_v9  ;;  %v124_v12 = vld [vmem:[%s213_s0 + $0x3] ss:$16 sm:%s64_s3]   ;;  %s78_s8 = smov 3  ;;  %v125_v13 = vld [vmem:[%s213_s0 - $0x15] ss:$16 sm:%s67_s4]  }
   0x7   :  { %29 = vrot.lane.b32.xlu0 %v28_v8, %s140_s5  ;;  %v126_v14 = vld [vmem:[%s213_s0 + $0x2] ss:$16 sm:%s78_s8]   ;;  %s81_s13 = smov 12  ;;  %s141_s14 = smov 64   ;;  %v70_v15 = vsel %vm13_vm0, %v125_v13, %v124_v12  ;;  %vm101_vm8 = vcmask 261248  }
   0x8   :  { %v127_v16 = vld [vmem:[%s213_s0 - $0x16] ss:$16 sm:%s81_s13]   ;;  %s92_s17 = smov 3  ;;  %s95_s18 = smov 12 }
   0x9   :  { %57 = vrot.lane.b32.xlu1 %v56_v11, %s141_s14  ;;  %v84_v17 = vsel %vm13_vm0, %v127_v16, %v126_v14  ;;  %v128_v18 = vld [vmem:[%s213_s0 + $0x1] ss:$16 sm:%s92_s17]   ;;  %s142_s23 = smov 48   ;;  %v2_v20 = vld [vmem:[%s213_s0] ss:$8 sm:$0xf]  }
   0xa   :  { %v129_v19 = vld [vmem:[%s213_s0 - $0x17] ss:$16 sm:%s95_s18]   ;;  %4 = vst.msk [vmem:[#allocation0] ss:$8 sm:$0x3] %vm3_vm1, %v2_v20   ;;  %s143_s0 = smov 32  }
   0xb   :  { %71 = vrot.lane.b32.xlu0 %v70_v15, %s142_s23  ;;  %v98_v21 = vsel %vm13_vm0, %v129_v19, %v128_v18  ;;  %6 = vst.msk [vmem:[#allocation0 - $0xf] ss:$8 sm:$0xc] %vm3_vm1, %v2_v20   ;;  %s144_s26 = smov 16  }
   0xd   :  { %85 = vrot.lane.b32.xlu1 %v84_v17, %s143_s0 }
   0xf   :  { %99 = vrot.lane.b32.xlu0 %v98_v21, %s144_s26 }
  0x75   :  { %v16_v22 = vpop.permute.xlu0 %15  }
  0x76   :  { %18 = vst.msk [vmem:[#allocation0] sm:$0x3] %vm17_vm2, %v16_v22   ;;  %20 = vst.msk [vmem:[#allocation0 + $0x6] sm:$0xc] %vm17_vm2, %v16_v22  }
  0x77   :  { %v44_v23 = vpop.permute.xlu1 %43  }
  0x79   :  { %v30_v24 = vpop.permute.xlu0 %29  }
  0x7a   :  { %32 = vst.msk [vmem:[#allocation0] sm:$0x3] %vm31_vm3, %v30_v24   ;;  %34 = vst.msk [vmem:[#allocation0 + $0x6] sm:$0xc] %vm31_vm3, %v30_v24  }
  0x7b   :  { %46 = vst.msk [vmem:[#allocation0] sm:$0x3] %vm45_vm4, %v44_v23   ;;  %48 = vst.msk [vmem:[#allocation0 + $0x6] sm:$0xc] %vm45_vm4, %v44_v23   ;;  %v58_v25 = vpop.permute.xlu1 %57  }
  0x7c   :  { %60 = vst.msk [vmem:[#allocation0] sm:$0x3] %vm59_vm5, %v58_v25   ;;  %62 = vst.msk [vmem:[#allocation0 + $0x6] sm:$0xc] %vm59_vm5, %v58_v25  }
  0x7d   :  { %v72_v26 = vpop.permute.xlu0 %71  }
  0x7e   :  { %74 = vst.msk [vmem:[#allocation0] sm:$0x3] %vm73_vm6, %v72_v26   ;;  %76 = vst.msk [vmem:[#allocation0 + $0x6] sm:$0xc] %vm73_vm6, %v72_v26  }
  0x7f   :  { %v86_v27 = vpop.permute.xlu1 %85  }
  0x80   :  { %88 = vst.msk [vmem:[#allocation0] sm:$0x3] %vm87_vm7, %v86_v27   ;;  %90 = vst.msk [vmem:[#allocation0 + $0x6] sm:$0xc] %vm87_vm7, %v86_v27  }
  0x81   :  { %v100_v28 = vpop.permute.xlu0 %99  }
  0x82   :  { %102 = vst.msk [vmem:[#allocation0] sm:$0x3] %vm101_vm8, %v100_v28   ;;  %104 = vst.msk [vmem:[#allocation0 + $0x6] sm:$0xc] %vm101_vm8, %v100_v28  }
  0x89   :  { %v108_v29 = vld [vmem:[#allocation0] sm:$0x3]  ;;  %v112_v30 = vld [vmem:[#allocation0 + $0x8] sm:$0x3] }
  0x8a   :  { %110 = vst [vmem:[%s214_s1] sm:$0x3] %v108_v29  ;;  %130 = vst [vmem:[%s214_s1 + $0x2] sm:$0x3] %v112_v30 }

// kernel: squeeze.3
= control target key start
LH: loop header
LB: loop body
LE: loop exit
PB: predicated region body
PF: predicated region fallthrough
CT: control target
= control target key end

     0   :  { %2 = vsyncpa [#allocation1], 0  ;;  %s160_s6 = smov [#allocation0]   ;;  %s205_s0 = inlined_call_operand.hbm [shape: f32[2,1,16,16], index: 0, kind: input, shape index: {}]   ;;  %s206_s1 = inlined_call_operand.vmem [shape: f32[2,256], index: 1, kind: output, shape index: {}]  }
   0x1   :  { %s7_s7 = sshll.u32 %s160_s6, 4  ;;  %s136_s10 = scalar_lea.hbm %s205_s0, 512  ;;  %s8_s7 = int_to_ptr.vmem [resolvable:$true] %s7_s7 }
   0x2   :  { %p137_p0 = scmp.ne.s32.totalorder %s205_s0, %s136_s10  ;;  %p140_p1 = scmp.lt.u32.totalorder %s136_s10, %s205_s0 }
   0x4   :  { %p142_p2 = pnand %p140_p1, %p137_p0 }
   0x6   :  { %145 = shalt.err (!%p142_p2)
}
   0x7   :  { %s146_s15 = scalar_lea.vmem %s8_s7, 512  ;;  %p151_p4 = scmp.lt.s32.totalorder %s8_s7, %s8_s7 }
   0x8   :  { %p147_p3 = scmp.ne.s32.totalorder %s8_s7, %s146_s15  ;;  %p152_p5 = scmp.lt.s32.totalorder %s146_s15, %s146_s15 }
   0xa   :  { %p153_p6 = por %p152_p5, %p151_p4 }
   0xc   :  { %p154_p7 = pnand %p153_p6, %p147_p3 }
   0xe   :  { %157 = shalt.err (!%p154_p7)
}
   0xf   :  { %10 = dma.hbm_to_vmem [thread:$0]  %s205_s0, 512, %s8_s7, [#allocation1]  }
  0x10   :  { %158 = dma.done.wait [#allocation1], 512  }
  0x11   :  { %159 = vsyncadd [#allocation1], 4294966784  ;;  %s18_s0 = smov 3  ;;  %s21_s18 = smov 12  ;;  %vm23_vm0 = vcmask 1043458   ;;  %vm13_vm1 = vcmask 130048  }
  0x12   :  { %s46_s19 = smov 3  ;;  %s49_s20 = smov 12  ;;  %v19_v0 = vld [vmem:[#allocation0 + $0x7] ss:$16 sm:%s18_s0]   ;;  %v22_v1 = vld [vmem:[#allocation0 - $0x11] ss:$16 sm:%s21_s18]  }
  0x13   :  { %s32_s21 = smov 3  ;;  %s35_s22 = smov 12  ;;  %v47_v2 = vld [vmem:[#allocation0 + $0x5] ss:$16 sm:%s46_s19]   ;;  %v24_v3 = vsel %vm23_vm0, %v22_v1, %v19_v0  ;;  %v50_v4 = vld [vmem:[#allocation0 - $0x13] ss:$16 sm:%s49_s20]  }
  0x14   :  { %s60_s23 = smov 3  ;;  %s63_s24 = smov 12  ;;  %v33_v5 = vld [vmem:[#allocation0 + $0x6] ss:$16 sm:%s32_s21]   ;;  %v36_v6 = vld [vmem:[#allocation0 - $0x12] ss:$16 sm:%s35_s22]   ;;  %v52_v7 = vsel %vm23_vm0, %v50_v4, %v47_v2 }
  0x15   :  { %s74_s25 = smov 3  ;;  %s77_s26 = smov 12  ;;  %v61_v8 = vld [vmem:[#allocation0 + $0x4] ss:$16 sm:%s60_s23]   ;;  %v64_v9 = vld [vmem:[#allocation0 - $0x14] ss:$16 sm:%s63_s24]   ;;  %v38_v10 = vsel %vm23_vm0, %v36_v6, %v33_v5 }
  0x16   :  { %s161_s27 = smov 112   ;;  %s162_s28 = smov 80   ;;  %v66_v11 = vsel %vm23_vm0, %v64_v9, %v61_v8  ;;  %v75_v12 = vld [vmem:[#allocation0 + $0x3] ss:$16 sm:%s74_s25]   ;;  %v78_v13 = vld [vmem:[#allocation0 - $0x15] ss:$16 sm:%s77_s26]  }
  0x17   :  { %25 = vrot.lane.b32.xlu0 %v24_v3, %s161_s27  ;;  %53 = vrot.lane.b32.xlu1 %v52_v7, %s162_s28  ;;  %s88_s29 = smov 3  ;;  %s91_s30 = smov 12  ;;  %v80_v16 = vsel %vm23_vm0, %v78_v13, %v75_v12  ;;  %v12_v17 = vld [vmem:[#allocation0] ss:$8 sm:$0xf]   ;;  %vm27_vm2 = vcmask 1048448  }
  0x18   :  { %v89_v14 = vld [vmem:[#allocation0 + $0x2] ss:$16 sm:%s88_s29]   ;;  %v92_v15 = vld [vmem:[#allocation0 - $0x16] ss:$16 sm:%s91_s30]   ;;  %s102_s2 = smov 3  ;;  %s105_s3 = smov 12 }
  0x19   :  { %s163_s4 = smov 96   ;;  %s164_s5 = smov 64   ;;  %v94_v18 = vsel %vm23_vm0, %v92_v15, %v89_v14  ;;  %v103_v19 = vld [vmem:[#allocation0 + $0x1] ss:$16 sm:%s102_s2]   ;;  %v106_v20 = vld [vmem:[#allocation0 - $0x17] ss:$16 sm:%s105_s3]  }
  0x1a   :  { %14 = vst.msk [vmem:[#allocation2] ss:$8 sm:$0x3] %vm13_vm1, %v12_v17   ;;  %16 = vst.msk [vmem:[#allocation2 - $0xf] ss:$8 sm:$0xc] %vm13_vm1, %v12_v17   ;;  %v108_v21 = vsel %vm23_vm0, %v106_v20, %v103_v19 }
  0x1b   :  { %39 = vrot.lane.b32.xlu0 %v38_v10, %s163_s4  ;;  %67 = vrot.lane.b32.xlu1 %v66_v11, %s164_s5  ;;  %s165_s6 = smov 48   ;;  %s166_s7 = smov 32   ;;  %vm41_vm3 = vcmask 917248   ;;  %vm55_vm4 = vcmask 786048   ;;  %vm69_vm5 = vcmask 654848   ;;  %vm83_vm6 = vcmask 523648  }
  0x1c   :  { %s167_s8 = smov 16   ;;  %vm97_vm7 = vcmask 392448   ;;  %vm111_vm8 = vcmask 261248  }
  0x1f   :  { %81 = vrot.lane.b32.xlu0 %v80_v16, %s165_s6  ;;  %95 = vrot.lane.b32.xlu1 %v94_v18, %s166_s7 }
  0x23   :  { %109 = vrot.lane.b32.xlu0 %v108_v21, %s167_s8 }
  0x89   :  { %v26_v22 = vpop.permute.xlu0 %25   ;;  %v54_v23 = vpop.permute.xlu1 %53  }
  0x8a   :  { %28 = vst.msk [vmem:[#allocation2] sm:$0x3] %vm27_vm2, %v26_v22   ;;  %30 = vst.msk [vmem:[#allocation2 + $0x6] sm:$0xc] %vm27_vm2, %v26_v22  }
  0x8d   :  { %v40_v24 = vpop.permute.xlu0 %39   ;;  %v68_v25 = vpop.permute.xlu1 %67  }
  0x8e   :  { %42 = vst.msk [vmem:[#allocation2] sm:$0x3] %vm41_vm3, %v40_v24   ;;  %44 = vst.msk [vmem:[#allocation2 + $0x6] sm:$0xc] %vm41_vm3, %v40_v24  }
  0x8f   :  { %56 = vst.msk [vmem:[#allocation2] sm:$0x3] %vm55_vm4, %v54_v23   ;;  %58 = vst.msk [vmem:[#allocation2 + $0x6] sm:$0xc] %vm55_vm4, %v54_v23  }
  0x90   :  { %70 = vst.msk [vmem:[#allocation2] sm:$0x3] %vm69_vm5, %v68_v25   ;;  %72 = vst.msk [vmem:[#allocation2 + $0x6] sm:$0xc] %vm69_vm5, %v68_v25  }
  0x91   :  { %v82_v26 = vpop.permute.xlu0 %81   ;;  %v96_v27 = vpop.permute.xlu1 %95  }
  0x92   :  { %84 = vst.msk [vmem:[#allocation2] sm:$0x3] %vm83_vm6, %v82_v26   ;;  %86 = vst.msk [vmem:[#allocation2 + $0x6] sm:$0xc] %vm83_vm6, %v82_v26  }
  0x93   :  { %98 = vst.msk [vmem:[#allocation2] sm:$0x3] %vm97_vm7, %v96_v27   ;;  %100 = vst.msk [vmem:[#allocation2 + $0x6] sm:$0xc] %vm97_vm7, %v96_v27  }
  0x95   :  { %v110_v28 = vpop.permute.xlu0 %109  }
  0x96   :  { %112 = vst.msk [vmem:[#allocation2] sm:$0x3] %vm111_vm8, %v110_v28   ;;  %114 = vst.msk [vmem:[#allocation2 + $0x6] sm:$0xc] %vm111_vm8, %v110_v28  }
  0x9d   :  { %v118_v29 = vld [vmem:[#allocation2] sm:$0x3]  ;;  %v122_v30 = vld [vmem:[#allocation2 + $0x8] sm:$0x3] }
  0x9e   :  { %120 = vst [vmem:[%s206_s1] sm:$0x3] %v118_v29  ;;  %127 = vst [vmem:[%s206_s1 + $0x2] sm:$0x3] %v122_v30 }
  0x9f   :  { %126 = vsyncpa [#allocation1], 1 }

// kernel: lovasz_hinge_loss.1
= control target key start
LH: loop header
LB: loop body
LE: loop exit
PB: predicated region body
PF: predicated region fallthrough
CT: control target
= control target key end

     0   :  { %v25_v1 = vlaneseq  ;;  %v488_v2 = vmov 1983009808   ;;  %s627_s0 = inlined_call_operand.vmem [shape: f32[2,256], index: 0, kind: input, shape index: {}]   ;;  %s628_s1 = inlined_call_operand.vmem [shape: bf16[2,256], index: 1, kind: input, shape index: {}]   ;;  %s629_s2 = inlined_call_operand.vmem [shape: f32[2,1], index: 2, kind: input, shape index: {}]   ;;  %s630_s3 = inlined_call_operand.hbm [shape: f32[1,1], index: 3, kind: output, shape index: {}]  }
   0x1   :  { %v23_v0 = vld [vmem:[%s628_s1] sm:$0x3]  ;;  %v32_v3 = vunpack.c.l.s4 %v488_v2 }
   0x2   :  { %8 = vsyncpa [#allocation6], 0  ;;  %v523_v4 = vshrl.u32 %v25_v1, 7  ;;  %v24_v5 = vunpack.c.l.bf16 %v23_v0  ;;  %s489_s14 = smov 1   ;;  %v539_v10 = vand.u32 127, %v25_v1  ;;  %s490_s1 = smov 2  }
   0x3   :  { %v33_v6 = vunpack.c.0.s8 %v32_v3  ;;  %s491_s15 = smov 4   ;;  %s492_s16 = smov 8   ;;  %vm19_vm10 = vcmask 1024   ;;  %v494_v58 = vmov 0.0   ;;  %v496_v62 = vmov 0  }
   0x4   :  { %vm45_vm0 = vcmp.lt.s32.totalorder %v539_v10, 1  ;;  %vm48_vm1 = vcmp.ge.s32.totalorder %v539_v10, 1  ;;  %vm79_vm2 = vcmp.lt.s32.totalorder %v539_v10, 2  ;;  %vm82_vm3 = vcmp.ge.s32.totalorder %v539_v10, 2  ;;  %s493_s17 = smov 16   ;;  %s495_s18 = smov 32   ;;  %456 = vset.pattern.permute.xlu0 %v496_v62  ;;  %457 = vset.pattern.permute.xlu1 %v496_v62 }
   0x5   :  { %v526_v7 = vsub.s32 %v33_v6, %v523_v4  ;;  %vm113_vm4 = vcmp.lt.s32.totalorder %v539_v10, 4  ;;  %vm116_vm5 = vcmp.ge.s32.totalorder %v539_v10, 4  ;;  %vm147_vm6 = vcmp.lt.s32.totalorder %v539_v10, 8  ;;  %20 = vst.msk [vmem:[#allocation2] sm:$0x3] %vm19_vm10, %v494_v58  ;;  %s497_s19 = smov 64  }
   0x6   :  { %vm150_vm7 = vcmp.ge.s32.totalorder %v539_v10, 8  ;;  %vm181_vm8 = vcmp.lt.s32.totalorder %v539_v10, 16  ;;  %vm184_vm9 = vcmp.ge.s32.totalorder %v539_v10, 16  ;;  %21 = vst.msk [vmem:[#allocation3] sm:$0x3] %vm19_vm10, %v494_v58  ;;  %vm215_vm11 = vcmp.lt.s32.totalorder %v539_v10, 32 }
   0x7   :  { %v529_v8 = vrot.slane %v24_v5, %v526_v7  ;;  %22 = vst.msk [vmem:[#allocation4] sm:$0x3] %vm19_vm10, %v494_v58  ;;  %vm218_vm12 = vcmp.ge.s32.totalorder %v539_v10, 32  ;;  %vm249_vm13 = vcmp.lt.s32.totalorder %v539_v10, 64  ;;  %vm252_vm14 = vcmp.ge.s32.totalorder %v539_v10, 64 }
   0x8   :  { %vm388_vm15 = vcmask 1041408  }
   0x9   :  { %41 = vrot.lane.b32.xlu0 %v529_v8, %s489_s14  ;;  %v535_v9 = vcombine.high %v529_v8, %v529_v8 }
   0xd   :  { %43 = vrot.lane.b32.xlu0 %v535_v9, %s489_s14 }
  0x7b   :  { %v42_v11 = vpop.permute.xlu0 %41 }
  0x7f   :  { %v44_v12 = vpop.permute.xlu0 %43 }
  0x80   :  { %v46_v13 = vsel %vm45_vm0, %v42_v11, %v44_v12  ;;  %v47_v14 = vsel %vm45_vm0, %v44_v12, %v42_v11 }
  0x81   :  { %v50_v15 = vsel %vm48_vm1, %v47_v14, 0.0  ;;  %v572_v14 = vld [vmem:[#allocation2] sm:$0x3]  ;;  %vm350_vm1 = vcmp.eq.s32.totalorder %v539_v10, 0 }
  0x82   :  { %v54_v16 = vcombine.low %v50_v15, %v46_v13  ;;  %v577_v15 = vld [vmem:[%s629_s2] sm:$0x3] }
  0x84   :  { %v61_v17 = vrot.slane %v54_v16, %v526_v7  ;;  %v352_v16 = vld [vmem:[#allocation3] sm:$0x3] }
  0x86   :  { %v63_v18 = vadd.f32 %v61_v17, %v24_v5 }
  0x88   :  { %v71_v19 = vrot.slane %v63_v18, %v526_v7 }
  0x8a   :  { %75 = vrot.lane.b32.xlu1 %v71_v19, %s490_s1  ;;  %v72_v20 = vcombine.high %v71_v19, %v71_v19 }
  0x8e   :  { %77 = vrot.lane.b32.xlu1 %v72_v20, %s490_s1 }
  0xfc   :  { %v76_v21 = vpop.permute.xlu1 %75 }
 0x100   :  { %v78_v22 = vpop.permute.xlu1 %77 }
 0x101   :  { %v80_v23 = vsel %vm79_vm2, %v76_v21, %v78_v22  ;;  %v81_v24 = vsel %vm79_vm2, %v78_v22, %v76_v21 }
 0x102   :  { %v84_v25 = vsel %vm82_vm3, %v81_v24, 0.0 }
 0x103   :  { %v88_v26 = vcombine.low %v84_v25, %v80_v23  ;;  %v498_v23 = vmov 269488144  }
 0x104   :  { %v300_v24 = vunpack.c.l.s4 %v498_v23  ;;  %v363_v23 = vld [vmem:[#allocation4] sm:$0x3] }
 0x105   :  { %v95_v27 = vrot.slane %v88_v26, %v526_v7 }
 0x107   :  { %v97_v28 = vadd.f32 %v95_v27, %v63_v18  ;;  %v301_v27 = vunpack.c.0.s8 %v300_v24 }
 0x109   :  { %v105_v29 = vrot.slane %v97_v28, %v526_v7 }
 0x10b   :  { %109 = vrot.lane.b32.xlu0 %v105_v29, %s491_s15  ;;  %v106_v30 = vcombine.high %v105_v29, %v105_v29 }
 0x10d   :  { %111 = vrot.lane.b32.xlu1 %v106_v30, %s491_s15  ;;  %v308_v30 = vadd.s32 1, %v539_v10 }
 0x17d   :  { %v110_v31 = vpop.permute.xlu0 %109 }
 0x17f   :  { %v112_v32 = vpop.permute.xlu1 %111 }
 0x180   :  { %v114_v33 = vsel %vm113_vm4, %v110_v31, %v112_v32  ;;  %v115_v34 = vsel %vm113_vm4, %v112_v32, %v110_v31  ;;  %v304_v32 = vsub.s32 %v301_v27, %v523_v4 }
 0x181   :  { %v118_v35 = vsel %vm116_vm5, %v115_v34, 0.0 }
 0x182   :  { %v122_v36 = vcombine.low %v118_v35, %v114_v33  ;;  %v314_v35 = vcvt.s32.f32 %v308_v30 }
 0x184   :  { %v129_v37 = vrot.slane %v122_v36, %v526_v7 }
 0x186   :  { %v131_v38 = vadd.f32 %v129_v37, %v97_v28  ;;  %v27_v28 = vadd.s32 128, %v539_v10 }
 0x188   :  { %v139_v39 = vrot.slane %v131_v38, %v526_v7  ;;  %v309_v33 = vadd.s32 1, %v27_v28 }
 0x18a   :  { %143 = vrot.lane.b32.xlu0 %v139_v39, %s492_s16  ;;  %v140_v40 = vcombine.high %v139_v39, %v139_v39  ;;  %v315_v39 = vcvt.s32.f32 %v309_v33 }
 0x18c   :  { %145 = vrot.lane.b32.xlu1 %v140_v40, %s492_s16 }
 0x1fc   :  { %v144_v41 = vpop.permute.xlu0 %143 }
 0x1fe   :  { %v146_v42 = vpop.permute.xlu1 %145 }
 0x1ff   :  { %v148_v43 = vsel %vm147_vm6, %v144_v41, %v146_v42  ;;  %v149_v44 = vsel %vm147_vm6, %v146_v42, %v144_v41 }
 0x200   :  { %v152_v45 = vsel %vm150_vm7, %v149_v44, 0.0 }
 0x201   :  { %v156_v46 = vcombine.low %v152_v45, %v148_v43 }
 0x203   :  { %v163_v47 = vrot.slane %v156_v46, %v526_v7 }
 0x205   :  { %v165_v48 = vadd.f32 %v163_v47, %v131_v38 }
 0x207   :  { %v173_v49 = vrot.slane %v165_v48, %v526_v7 }
 0x209   :  { %177 = vrot.lane.b32.xlu0 %v173_v49, %s493_s17  ;;  %v174_v50 = vcombine.high %v173_v49, %v173_v49 }
 0x20b   :  { %179 = vrot.lane.b32.xlu1 %v174_v50, %s493_s17 }
 0x27b   :  { %v178_v51 = vpop.permute.xlu0 %177 }
 0x27d   :  { %v180_v52 = vpop.permute.xlu1 %179 }
 0x27e   :  { %v182_v53 = vsel %vm181_vm8, %v178_v51, %v180_v52  ;;  %v183_v54 = vsel %vm181_vm8, %v180_v52, %v178_v51 }
 0x27f   :  { %v186_v55 = vsel %vm184_vm9, %v183_v54, 0.0 }
 0x280   :  { %v190_v56 = vcombine.low %v186_v55, %v182_v53  ;;  %v397_v55 = vsel %vm388_vm15, %v529_v8, 0.0  ;;  %v362_v8 = vld [vmem:[%s627_s0] sm:$0xf]  ;;  %s499_s0 = smov [#allocation5]  }
 0x281   :  { %s436_s23 = sshll.u32 %s499_s0, 4  ;;  %s437_s23 = int_to_ptr.vmem [resolvable:$true] %s436_s23 }
 0x282   :  { %v197_v57 = vrot.slane %v190_v56, %v526_v7  ;;  %v398_v56 = vsel %vm388_vm15, %v535_v9, 0.0  ;;  %s464_s24 = scalar_lea.vmem %s437_s23, 16  ;;  %s468_s25 = scalar_lea.vmem %s437_s23, 32 }
 0x283   :  { %p465_p0 = scmp.ne.s32.totalorder %s437_s23, %s464_s24  ;;  %p469_p1 = scmp.lt.s32.totalorder %s437_s23, %s437_s23 }
 0x284   :  { %v199_v59 = vadd.f32 %v197_v57, %v165_v48  ;;  %v399_v57 = vadd.f32 %v398_v56, %v397_v55  ;;  %p470_p2 = scmp.lt.s32.totalorder %s468_s25, %s464_s24 }
 0x286   :  { %v207_v60 = vrot.slane %v199_v59, %v526_v7  ;;  %p471_p3 = por %p470_p2, %p469_p1 }
 0x288   :  { %211 = vrot.lane.b32.xlu0 %v207_v60, %s495_s18  ;;  %v208_v61 = vcombine.high %v207_v60, %v207_v60  ;;  %p472_p4 = pnand %p471_p3, %p465_p0 }
 0x28a   :  { %213 = vrot.lane.b32.xlu1 %v208_v61, %s495_s18 }
 0x2fa   :  { %v212_v63 = vpop.permute.xlu0 %211 }
 0x2fc   :  { %v214_v0 = vpop.permute.xlu1 %213 }
 0x2fd   :  { %v216_v1 = vsel %vm215_vm11, %v212_v63, %v214_v0  ;;  %v217_v2 = vsel %vm215_vm11, %v214_v0, %v212_v63 }
 0x2fe   :  { %v220_v3 = vsel %vm218_vm12, %v217_v2, 0.0  ;;  %v364_v2 = vmax.f32 %v362_v8, 0.0 }
 0x2ff   :  { %v224_v5 = vcombine.low %v220_v3, %v216_v1 }
 0x301   :  { %v231_v6 = vrot.slane %v224_v5, %v526_v7 }
 0x303   :  { %v233_v11 = vadd.f32 %v231_v6, %v199_v59 }
 0x305   :  { %v241_v12 = vrot.slane %v233_v11, %v526_v7 }
 0x307   :  { %245 = vrot.lane.b32.xlu0 %v241_v12, %s497_s19  ;;  %v242_v13 = vcombine.high %v241_v12, %v241_v12 }
 0x309   :  { %247 = vrot.lane.b32.xlu1 %v242_v13, %s497_s19 }
 0x30b   :  { %297 = vperm.xlu0 %456, %v572_v14  }
 0x30d   :  { %318 = vperm.xlu1 %457, %v577_v15  }
 0x311   :  { %355 = vperm.xlu1 %457, %v352_v16   ;;  %v407_v16 = vadd.f32 256.0, %v577_v15 }
 0x379   :  { %v246_v17 = vpop.permute.xlu0 %245 }
 0x37b   :  { %v248_v18 = vpop.permute.xlu1 %247 }
 0x37c   :  { %v250_v19 = vsel %vm249_vm13, %v246_v17, %v248_v18  ;;  %v251_v20 = vsel %vm249_vm13, %v248_v18, %v246_v17 }
 0x37d   :  { %v254_v21 = vsel %vm252_vm14, %v251_v20, 0.0 }
 0x37e   :  { %v258_v22 = vcombine.low %v254_v21, %v250_v19 }
 0x380   :  { %v265_v25 = vrot.slane %v258_v22, %v526_v7 }
 0x382   :  { %v267_v26 = vadd.f32 %v265_v25, %v233_v11 }
 0x384   :  { %v275_v29 = vrot.slane %v267_v26, %v526_v7 }
 0x386   :  { %v285_v31 = vcombine.low %v494_v58, %v275_v29 }
 0x388   :  { %v292_v34 = vrot.slane %v285_v31, %v526_v7 }
 0x38a   :  { %v294_v36 = vadd.f32 %v292_v34, %v267_v26  ;;  %v298_v37 = vpop.permute.xlu0 %297 }
 0x38b   :  { %v305_v38 = vrot.slane %v298_v37, %v304_v32 }
 0x38c   :  { %v319_v40 = vpop.permute.xlu1 %318 }
 0x38d   :  { %v307_v41 = vadd.f32 %v305_v38, %v294_v36  ;;  %v334_v42 = vadd.f32 %v319_v40, %v314_v35  ;;  %v335_v44 = vadd.f32 %v319_v40, %v315_v39 }
 0x38f   :  { %v328_v43 = vrot.slane %v307_v41, %v526_v7 }
 0x390   :  { %v356_v58 = vpop.permute.xlu1 %355 }
 0x391   :  { %v329_v45 = vcombine.high %v328_v43, %v328_v43  ;;  %v336_v46 = vsub.f32 %v334_v42, %v328_v43  ;;  %v332_v4 = vsub.f32 %v319_v40, %v328_v43 }
 0x393   :  { %v337_v47 = vsub.f32 %v335_v44, %v329_v45  ;;  %458 = vrcp.f32 %v336_v46  ;;  %v333_v49 = vsub.f32 %v319_v40, %v329_v45 }
 0x395   :  { %460 = vrcp.f32 %v337_v47 }
 0x39d   :  { %v459_v48 = vpop.eup %458 }
 0x39e   :  { %v340_v50 = vmul.f32 %v459_v48, %v332_v4 }
 0x39f   :  { %v461_v51 = vpop.eup %460 }
 0x3a0   :  { %v342_v52 = vsub.f32 1.0, %v340_v50  ;;  %v341_v53 = vmul.f32 %v461_v51, %v333_v49 }
 0x3a2   :  { %344 = vrot.lane.b32.xlu0 %v342_v52, %s489_s14  ;;  %v343_v54 = vsub.f32 1.0, %v341_v53 }
 0x3a4   :  { %346 = vrot.lane.b32.xlu1 %v343_v54, %s489_s14 }
 0x3c8   :  { %400 = vadd.xlane.f32.xlu1 %v399_v57 }
 0x414   :  { %v345_v59 = vpop.permute.xlu0 %344 }
 0x416   :  { %v347_v60 = vpop.permute.xlu1 %346 }
 0x417   :  { %v348_v61 = vsel %vm45_vm0, %v345_v59, %v347_v60  ;;  %v349_v62 = vsel %vm45_vm0, %v347_v60, %v345_v59  ;;  %vm428_vm0 = vcmask 0  }
 0x418   :  { %v358_v63 = vsel %vm350_vm1, %v356_v58, %v349_v62  ;;  %v361_v0 = vsub.f32 %v343_v54, %v348_v61 }
 0x419   :  { %v360_v9 = vsub.f32 %v342_v52, %v358_v63 }
 0x41b   :  { %v367_v1 = vcombine.low %v360_v9, %v361_v0 }
 0x41d   :  { %v374_v3 = vrot.slane %v367_v1, %v526_v7 }
 0x41f   :  { %v376_v5 = vmul.f32 %v374_v3, %v364_v2 }
 0x421   :  { %v384_v6 = vrot.slane %v376_v5, %v526_v7 }
 0x423   :  { %v385_v11 = vcombine.high %v384_v6, %v384_v6  ;;  %v389_v12 = vsel %vm388_vm15, %v384_v6, 0.0 }
 0x425   :  { %v390_v10 = vsel %vm388_vm15, %v385_v11, 0.0 }
 0x426   :  { %v391_v13 = vadd.f32 %v390_v10, %v389_v12 }
 0x428   :  { %392 = vadd.xlane.f32.xlu0 %v391_v13 }
 0x455   :  { %v401_v17 = vpop.xlane.xlu1 %400 }
 0x456   :  { %v402_v18 = vadd.f32 %v401_v17, %v572_v14 }
 0x458   :  { %v408_v19 = vsub.f32 %v407_v16, %v402_v18  ;;  %414 = vst.msk [vmem:[#allocation2] sm:$0x3] %vm19_vm10, %v402_v18  ;;  %v409_v20 = vsub.f32 %v577_v15, %v402_v18 }
 0x45a   :  { %462 = vrcp.f32 %v408_v19 }
 0x464   :  { %v463_v21 = vpop.eup %462 }
 0x465   :  { %v411_v7 = vmul.f32 %v463_v21, %v409_v20 }
 0x467   :  { %v412_v22 = vsub.f32 1.0, %v411_v7 }
 0x469   :  { %413 = vst.msk [vmem:[#allocation3] sm:$0x3] %vm19_vm10, %v412_v22 }
 0x4b5   :  { %v393_v24 = vpop.xlane.xlu0 %392 }
 0x4b6   :  { %v394_v25 = vadd.f32 %v393_v24, %v363_v23 }
 0x4b8   :  { %396 = vst.msk [vmem:[#allocation4] sm:$0x3] %vm19_vm10, %v394_v25 }
 0x4bf   :  { %v418_v26 = vld [vmem:[#allocation4] sm:$0x3] }
 0x4c0   :  { %v419_v27 = vsel %vm19_vm10, %v418_v26, 0.0 }
 0x4c1   :  { %v420_v14 = vrot.slane %v419_v27, 4 }
 0x4c3   :  { %v421_v28 = vadd.f32 %v420_v14, %v419_v27 }
 0x4c5   :  { %v422_v29 = vrot.slane %v421_v28, 2 }
 0x4c7   :  { %v423_v30 = vadd.f32 %v422_v29, %v421_v28 }
 0x4c9   :  { %v424_v31 = vrot.slane %v423_v30, 1 }
 0x4cb   :  { %v425_v15 = vadd.f32 %v424_v31, %v423_v30 }
 0x4cd   :  { %v427_v32 = vmul.f32 0.5, %v425_v15 }
 0x4cf   :  { %429 = vst.msk [vmem:[#allocation5] sm:$0x1] %vm428_vm0, %v427_v32 }
 0x4d0   :  { %475 = shalt.err (!%p472_p4)
}
 0x4d1   :  { %s476_s28 = scalar_lea.hbm %s630_s3, 16 }
 0x4d2   :  { %p477_p5 = scmp.ne.s32.totalorder %s630_s3, %s476_s28  ;;  %p480_p6 = scmp.lt.u32.totalorder %s476_s28, %s630_s3 }
 0x4d4   :  { %p482_p7 = pnand %p480_p6, %p477_p5 }
 0x4d6   :  { %485 = shalt.err (!%p482_p7)
}
 0x4d7   :  { %439 = dma.vmem_to_hbm [thread:$0]  %s437_s23, 16, %s630_s3, [#allocation6]  }
 0x4d8   :  { %486 = dma.done.wait [#allocation6], 16  }
 0x4d9   :  { %487 = vsyncadd [#allocation6], 4294967280 }
 0x4da   :  { %443 = vsyncpa [#allocation6], 1 }

</bundles_post_ra>
